<compile_context>
chip_gen: v5e
topology: v5e:2x2
jax: 0.10.0
libtpu: 0.0.40
codegen_flags: <defaults>
</compile_context>

<pallas_src>
import math

import jax
import jax.numpy as jnp
import numpy as np
from jax.experimental import pallas as pl
from jax.experimental.pallas import tpu as pltpu


# ---------------------------------------------------------------------------
# Pallas kernel: fused RoPE multi-head causal attention + output projection
# ---------------------------------------------------------------------------
def _fused_mha_kernel(x_ref, wqkv_ref, cos_ref, sin_ref, wo_ref, bo_ref, o_ref):
    """One batch element per grid step.

    x_ref    : (1, M, D)    input sequence
    wqkv_ref : (D, 5*H*D)   [Wq | Wq_swap | Wk | Wk_swap | Wv], pre-transposed (in, out)
    cos_ref  : (M, H*D)     per-position cos, tiled across heads
    sin_ref  : (M, H*D)     per-position +/- sin (sign pattern of the 2x2 rotation blocks)
    wo_ref   : (H*D, D)     output projection weight, pre-transposed
    bo_ref   : (1, D)       output projection bias
    o_ref    : (1, M, D)    result
    """
    f32 = jnp.float32
    M, D = o_ref.shape[1], o_ref.shape[2]
    HD = wo_ref.shape[0]
    H = HD // D

    x = x_ref[0]                                                     # (M, D)

    # All projections (q, swapped-q, k, swapped-k, v) for every head in one
    # lane-dense MXU matmul.
    qkv = jnp.dot(x, wqkv_ref[...], preferred_element_type=f32)      # (M, 5*HD)
    q, qs = qkv[:, 0:HD], qkv[:, HD:2 * HD]
    k, ks = qkv[:, 2 * HD:3 * HD], qkv[:, 3 * HD:4 * HD]
    v = qkv[:, 4 * HD:5 * HD]

    # RoPE: q_rot = q*cos + swap_pairs(q)*sin ; the pair swap is folded into qs/ks.
    cos = cos_ref[...]
    sin = sin_ref[...]
    q_rot = q * cos + qs * sin                                       # (M, HD)
    k_rot = k * cos + ks * sin

    # Causal mask (is_causal=True in F.scaled_dot_product_attention).
    row = jax.lax.broadcasted_iota(jnp.int32, (M, M), 0)
    col = jax.lax.broadcasted_iota(jnp.int32, (M, M), 1)
    causal = col <= row
    scale = 1.0 / math.sqrt(D)

    y = jnp.zeros((M, D), f32)
    for h in range(H):                       # static unroll over heads
        lo = h * D
        qh = q_rot[:, lo:lo + D].astype(jnp.bfloat16)
        kh = k_rot[:, lo:lo + D].astype(jnp.bfloat16)
        vh = v[:, lo:lo + D].astype(jnp.bfloat16)

        # scores = q_rot @ k_rot^T without materializing a transpose (bf16 in, f32 acc).
        s = jax.lax.dot_general(qh, kh, (((1,), (1,)), ((), ())),
                                preferred_element_type=f32) * scale   # (M, M)
        s = jnp.where(causal, s, -jnp.inf)

        s_max = jnp.max(s, axis=-1, keepdims=True)
        p = jnp.exp(s - s_max)
        denom = jnp.sum(p, axis=-1, keepdims=True)
        p = p * pl.reciprocal(denom, approx=True)                     # EUP, not VPU divide

        oh = jnp.dot(p.astype(jnp.bfloat16), vh,
                     preferred_element_type=f32)                      # (M, D)

        # Fused output projection: y += head_h_out @ W_o^T[h*D:(h+1)*D, :]
        y = y + jnp.dot(oh, wo_ref[pl.ds(lo, D), :],
                        preferred_element_type=f32)

    # TODO(synk): dropout is eval-mode identity.
    o_ref[0] = (y + bo_ref[...]).astype(o_ref.dtype)


# ---------------------------------------------------------------------------
# Wrapper (all layout plumbing lives here, outside the kernel)
# ---------------------------------------------------------------------------
def rope_masked_mha(x, wq, wk, wv, w_out, b_out, cos_full, sin_full):
    """x: (B, M, D); wq/wk/wv: (H, D, D) torch-Linear layout (out, in);
    w_out: (D, H*D); b_out: (D,); cos_full/sin_full: (CTX, D).  Returns (B, M, D)."""
    B, M, D = x.shape
    H = wq.shape[0]
    HD = H * D

    def stack_t(w):                                   # (H, D, D) -> (D, H*D), (in, out)
        return jnp.transpose(w, (2, 0, 1)).reshape(D, HD)

    wq_t, wk_t, wv_t = stack_t(wq), stack_t(wk), stack_t(wv)
    # Pair-swap permutation (2i <-> 2i+1) folded into extra weight copies.
    perm = np.arange(HD).reshape(-1, 2)[:, ::-1].reshape(-1)
    w_qkv = jnp.concatenate(
        [wq_t, jnp.take(wq_t, perm, axis=1),
         wk_t, jnp.take(wk_t, perm, axis=1), wv_t], axis=1)          # (D, 5*HD)

    cos_t = jnp.tile(cos_full[:M], (1, H))                           # (M, HD)
    sin_t = jnp.tile(sin_full[:M], (1, H))
    wo_t = w_out.T                                                   # (HD, D)
    bo = b_out.reshape(1, D)

    return pl.pallas_call(
        _fused_mha_kernel,
        out_shape=jax.ShapeDtypeStruct((B, M, D), jnp.float32),
        grid=(B,),
        in_specs=[
            pl.BlockSpec((1, M, D), lambda b: (b, 0, 0)),    # x
            pl.BlockSpec((D, 5 * HD), lambda b: (0, 0)),     # stacked QKV(+swapped) weights
            pl.BlockSpec((M, HD), lambda b: (0, 0)),         # cos
            pl.BlockSpec((M, HD), lambda b: (0, 0)),         # signed sin
            pl.BlockSpec((HD, D), lambda b: (0, 0)),         # W_o^T
            pl.BlockSpec((1, D), lambda b: (0, 0)),          # b_o
        ],
        out_specs=pl.BlockSpec((1, M, D), lambda b: (b, 0, 0)),
        compiler_params=pltpu.CompilerParams(
            dimension_semantics=("parallel",)),
    )(x, w_qkv, cos_t, sin_t, wo_t, bo)


# ---------------------------------------------------------------------------
# Parameter construction (deterministic, synthetic)
# ---------------------------------------------------------------------------
def rope_cos_sin(context_window, d):
    """cos / signed-sin vectors equivalent to the dense Rotary_embeddings matrices."""
    pos = np.arange(context_window, dtype=np.float64)[:, None]      # (CTX, 1)
    i = np.arange(d // 2, dtype=np.float64)[None, :]                # (1, d/2)
    phi = 10000.0 ** (-2.0 * (i - 1.0) / d)
    ang = pos * phi                                                  # (CTX, d/2)
    cos = np.repeat(np.cos(ang), 2, axis=1)                          # (CTX, d)
    sin = np.repeat(np.sin(ang), 2, axis=1)
    sign = np.tile(np.array([1.0, -1.0]), d // 2)[None, :]           # +sin even, -sin odd
    return (jnp.asarray(cos.astype(np.float32)),
            jnp.asarray((sin * sign).astype(np.float32)))


def rotary_matrices(context_window, d):
    """Exact reproduction of RoPEMaskedAttentionHead.Rotary_embeddings (reference only)."""
    r = np.zeros((context_window, d, d), dtype=np.float32)
    for pos in range(context_window):
        for i in range(d // 2):
            phi = 10000 ** (-2 * (i - 1) / d)
            m_phi = pos * phi
            r[pos, 2 * i, 2 * i] = np.cos(m_phi)
            r[pos, 2 * i, 2 * i + 1] = -np.sin(m_phi)
            r[pos, 2 * i + 1, 2 * i] = np.sin(m_phi)
            r[pos, 2 * i + 1, 2 * i + 1] = np.cos(m_phi)
    return jnp.asarray(r)


def reference_forward(x, wq, wk, wv, r_full, w_out, b_out):
    """Pure-JAX reference mirroring the PyTorch module (eval mode, dense R)."""
    B, M, D = x.shape
    r = r_full[:M]
    heads = []
    for h in range(wq.shape[0]):
        q = x @ wq[h].T
        k = x @ wk[h].T
        v = x @ wv[h].T
        q_rot = jnp.einsum('bmd,mde->bme', q, r)
        k_rot = jnp.einsum('bmd,mde->bme', k, r)
        scores = jnp.einsum('bqd,bkd->bqk', q_rot, k_rot) / math.sqrt(D)
        mask = np.tril(np.ones((M, M), dtype=bool))
        scores = jnp.where(mask, scores, -jnp.inf)
        probs = jax.nn.softmax(scores, axis=-1)
        heads.append(jnp.einsum('bqk,bkd->bqd', probs, v))
    cat = jnp.concatenate(heads, axis=-1)
    return cat @ w_out.T + b_out


# ---------------------------------------------------------------------------
if __name__ == "__main__":
    config = dict(d_model=32, context_window=16, n_heads=4)
    B, M = 2, 8
    D = config["d_model"]
    H = config["n_heads"]

    key = jax.random.PRNGKey(0)
    kx, kq, kk, kv, kw, kb = jax.random.split(key, 6)

    scale = 1.0 / math.sqrt(D)
    x = jax.random.normal(kx, (B, M, D), dtype=jnp.float32)
    wq = jax.random.uniform(kq, (H, D, D), minval=-scale, maxval=scale, dtype=jnp.float32)
    wk = jax.random.uniform(kk, (H, D, D), minval=-scale, maxval=scale, dtype=jnp.float32)
    wv = jax.random.uniform(kv, (H, D, D), minval=-scale, maxval=scale, dtype=jnp.float32)
    w_out = jax.random.uniform(kw, (D, H * D),
                               minval=-1.0 / math.sqrt(H * D),
                               maxval=1.0 / math.sqrt(H * D), dtype=jnp.float32)
    b_out = jax.random.uniform(kb, (D,),
                               minval=-1.0 / math.sqrt(H * D),
                               maxval=1.0 / math.sqrt(H * D), dtype=jnp.float32)

    cos_full, sin_full = rope_cos_sin(config["context_window"], D)

    out = rope_masked_mha(x, wq, wk, wv, w_out, b_out, cos_full, sin_full)
    out = jax.block_until_ready(out)

    r_full = rotary_matrices(config["context_window"], D)
    ref = reference_forward(x, wq, wk, wv, r_full, w_out, b_out)
    # bf16 MXU operands in the score / probs@V matmuls -> slightly looser tolerance
    np.testing.assert_allclose(np.asarray(out), np.asarray(ref), rtol=2e-2, atol=2e-2)

    print("KERNEL_OK")
</pallas_src>

<mosaic_0001>
module attributes {stable_mosaic.version = 11 : i64} {
  func.func @_fused_mha_kernel(%arg0: i32, %arg1: memref<1x8x32xf32, #tpu.memory_space<vmem>>, %arg2: memref<32x640xf32, #tpu.memory_space<vmem>>, %arg3: memref<8x128xf32, #tpu.memory_space<vmem>>, %arg4: memref<8x128xf32, #tpu.memory_space<vmem>>, %arg5: memref<128x32xf32, #tpu.memory_space<vmem>>, %arg6: memref<1x32xf32, #tpu.memory_space<vmem>>, %arg7: memref<1x8x32xf32, #tpu.memory_space<vmem>>) attributes {dimension_semantics = [#tpu.dimension_semantics<parallel>], iteration_bounds = array<i64: 2>, scalar_prefetch = 0 : i64, scratch_operands = 0 : i64, tpu.core_type = #tpu.core_type<tc>, window_params = [{transform_indices = @transform_0, window_bounds = array<i64: 1, 8, 32>}, {pipeline_mode = #tpu.pipeline_mode<synchronous>, transform_indices = @transform_1, window_bounds = array<i64: 32, 640>}, {pipeline_mode = #tpu.pipeline_mode<synchronous>, transform_indices = @transform_2, window_bounds = array<i64: 8, 128>}, {pipeline_mode = #tpu.pipeline_mode<synchronous>, transform_indices = @transform_3, window_bounds = array<i64: 8, 128>}, {pipeline_mode = #tpu.pipeline_mode<synchronous>, transform_indices = @transform_4, window_bounds = array<i64: 128, 32>}, {pipeline_mode = #tpu.pipeline_mode<synchronous>, transform_indices = @transform_5, window_bounds = array<i64: 1, 32>}, {transform_indices = @transform_6, window_bounds = array<i64: 1, 8, 32>}]} {
    %c0 = arith.constant 0 : index
    %c0_0 = arith.constant 0 : index
    %c0_1 = arith.constant 0 : index
    %0 = vector.load %arg1[%c0, %c0_0, %c0_1] : memref<1x8x32xf32, #tpu.memory_space<vmem>>, vector<1x8x32xf32>
    %1 = vector.shape_cast %0 : vector<1x8x32xf32> to vector<8x32xf32>
    %c0_2 = arith.constant 0 : index
    %c0_3 = arith.constant 0 : index
    %2 = vector.load %arg2[%c0_2, %c0_3] : memref<32x640xf32, #tpu.memory_space<vmem>>, vector<32x640xf32>
    %cst = arith.constant dense<0.000000e+00> : vector<8x640xf32>
    %3 = tpu.matmul %1, %2, %cst {dimension_numbers = #tpu.dot_dimension_numbers<[1], [0], [0], [1], [0, 0, 1, 1], [], []>} : vector<8x32xf32>, vector<32x640xf32>, vector<8x640xf32> -> vector<8x640xf32>
    %4 = vector.extract_strided_slice %3 {offsets = [0, 0], sizes = [8, 128], strides = [1, 1]} : vector<8x640xf32> to vector<8x128xf32>
    %5 = vector.extract_strided_slice %3 {offsets = [0, 128], sizes = [8, 128], strides = [1, 1]} : vector<8x640xf32> to vector<8x128xf32>
    %6 = vector.extract_strided_slice %3 {offsets = [0, 256], sizes = [8, 128], strides = [1, 1]} : vector<8x640xf32> to vector<8x128xf32>
    %7 = vector.extract_strided_slice %3 {offsets = [0, 384], sizes = [8, 128], strides = [1, 1]} : vector<8x640xf32> to vector<8x128xf32>
    %8 = vector.extract_strided_slice %3 {offsets = [0, 512], sizes = [8, 128], strides = [1, 1]} : vector<8x640xf32> to vector<8x128xf32>
    %c0_4 = arith.constant 0 : index
    %c0_5 = arith.constant 0 : index
    %9 = vector.load %arg3[%c0_4, %c0_5] : memref<8x128xf32, #tpu.memory_space<vmem>>, vector<8x128xf32>
    %c0_6 = arith.constant 0 : index
    %c0_7 = arith.constant 0 : index
    %10 = vector.load %arg4[%c0_6, %c0_7] : memref<8x128xf32, #tpu.memory_space<vmem>>, vector<8x128xf32>
    %11 = arith.mulf %4, %9 : vector<8x128xf32>
    %12 = arith.mulf %5, %10 : vector<8x128xf32>
    %13 = arith.addf %11, %12 : vector<8x128xf32>
    %14 = arith.mulf %6, %9 : vector<8x128xf32>
    %15 = arith.mulf %7, %10 : vector<8x128xf32>
    %16 = arith.addf %14, %15 : vector<8x128xf32>
    %17 = tpu.iota {dimensions = array<i32: 0>} : vector<8x8xi32>
    %18 = tpu.iota {dimensions = array<i32: 1>} : vector<8x8xi32>
    %19 = arith.cmpi sle, %18, %17 : vector<8x8xi32>
    %cst_8 = arith.constant 0.000000e+00 : f32
    %20 = vector.broadcast %cst_8 : f32 to vector<8x32xf32>
    %21 = vector.extract_strided_slice %13 {offsets = [0, 0], sizes = [8, 32], strides = [1, 1]} : vector<8x128xf32> to vector<8x32xf32>
    %22 = arith.truncf %21 : vector<8x32xf32> to vector<8x32xbf16>
    %23 = vector.extract_strided_slice %16 {offsets = [0, 0], sizes = [8, 32], strides = [1, 1]} : vector<8x128xf32> to vector<8x32xf32>
    %24 = arith.truncf %23 : vector<8x32xf32> to vector<8x32xbf16>
    %25 = vector.extract_strided_slice %8 {offsets = [0, 0], sizes = [8, 32], strides = [1, 1]} : vector<8x128xf32> to vector<8x32xf32>
    %26 = arith.truncf %25 : vector<8x32xf32> to vector<8x32xbf16>
    %cst_9 = arith.constant dense<0.000000e+00> : vector<8x8xf32>
    %27 = tpu.matmul %22, %24, %cst_9 {dimension_numbers = #tpu.dot_dimension_numbers<[1], [1], [0], [0], [0, 0, 1, 0], [], []>} : vector<8x32xbf16>, vector<8x32xbf16>, vector<8x8xf32> -> vector<8x8xf32>
    %cst_10 = arith.constant 0.176776692 : f32
    %28 = vector.broadcast %cst_10 : f32 to vector<8x8xf32>
    %29 = arith.mulf %27, %28 : vector<8x8xf32>
    %cst_11 = arith.constant 0xFF800000 : f32
    %30 = vector.broadcast %cst_11 : f32 to vector<8x8xf32>
    %31 = arith.select %19, %29, %30 : vector<8x8xi1>, vector<8x8xf32>
    %cst_12 = arith.constant dense<0xFF800000> : vector<8xf32>
    %32 = vector.multi_reduction <maximumf>, %31, %cst_12 [1] : vector<8x8xf32> to vector<8xf32>
    %33 = vector.shape_cast %32 : vector<8xf32> to vector<8x1xf32>
    %34 = vector.broadcast %33 : vector<8x1xf32> to vector<8x8xf32>
    %35 = arith.subf %31, %34 : vector<8x8xf32>
    %36 = math.exp %35 : vector<8x8xf32>
    %cst_13 = arith.constant dense<0.000000e+00> : vector<8xf32>
    %37 = vector.multi_reduction <add>, %36, %cst_13 [1] : vector<8x8xf32> to vector<8xf32>
    %38 = vector.shape_cast %37 : vector<8xf32> to vector<8x1xf32>
    %39 = tpu.reciprocal %38 {approx = true} : vector<8x1xf32> -> vector<8x1xf32>
    %40 = vector.broadcast %39 : vector<8x1xf32> to vector<8x8xf32>
    %41 = arith.mulf %36, %40 : vector<8x8xf32>
    %42 = arith.truncf %41 : vector<8x8xf32> to vector<8x8xbf16>
    %cst_14 = arith.constant dense<0.000000e+00> : vector<8x32xf32>
    %43 = tpu.matmul %42, %26, %cst_14 {dimension_numbers = #tpu.dot_dimension_numbers<[1], [0], [0], [1], [0, 0, 1, 1], [], []>} : vector<8x8xbf16>, vector<8x32xbf16>, vector<8x32xf32> -> vector<8x32xf32>
    %c0_15 = arith.constant 0 : index
    %c0_16 = arith.constant 0 : index
    %44 = vector.load %arg5[%c0_15, %c0_16] : memref<128x32xf32, #tpu.memory_space<vmem>>, vector<32x32xf32>
    %cst_17 = arith.constant dense<0.000000e+00> : vector<8x32xf32>
    %45 = tpu.matmul %43, %44, %cst_17 {dimension_numbers = #tpu.dot_dimension_numbers<[1], [0], [0], [1], [0, 0, 1, 1], [], []>} : vector<8x32xf32>, vector<32x32xf32>, vector<8x32xf32> -> vector<8x32xf32>
    %46 = arith.addf %20, %45 : vector<8x32xf32>
    %47 = vector.extract_strided_slice %13 {offsets = [0, 32], sizes = [8, 32], strides = [1, 1]} : vector<8x128xf32> to vector<8x32xf32>
    %48 = arith.truncf %47 : vector<8x32xf32> to vector<8x32xbf16>
    %49 = vector.extract_strided_slice %16 {offsets = [0, 32], sizes = [8, 32], strides = [1, 1]} : vector<8x128xf32> to vector<8x32xf32>
    %50 = arith.truncf %49 : vector<8x32xf32> to vector<8x32xbf16>
    %51 = vector.extract_strided_slice %8 {offsets = [0, 32], sizes = [8, 32], strides = [1, 1]} : vector<8x128xf32> to vector<8x32xf32>
    %52 = arith.truncf %51 : vector<8x32xf32> to vector<8x32xbf16>
    %cst_18 = arith.constant dense<0.000000e+00> : vector<8x8xf32>
    %53 = tpu.matmul %48, %50, %cst_18 {dimension_numbers = #tpu.dot_dimension_numbers<[1], [1], [0], [0], [0, 0, 1, 0], [], []>} : vector<8x32xbf16>, vector<8x32xbf16>, vector<8x8xf32> -> vector<8x8xf32>
    %cst_19 = arith.constant 0.176776692 : f32
    %54 = vector.broadcast %cst_19 : f32 to vector<8x8xf32>
    %55 = arith.mulf %53, %54 : vector<8x8xf32>
    %cst_20 = arith.constant 0xFF800000 : f32
    %56 = vector.broadcast %cst_20 : f32 to vector<8x8xf32>
    %57 = arith.select %19, %55, %56 : vector<8x8xi1>, vector<8x8xf32>
    %cst_21 = arith.constant dense<0xFF800000> : vector<8xf32>
    %58 = vector.multi_reduction <maximumf>, %57, %cst_21 [1] : vector<8x8xf32> to vector<8xf32>
    %59 = vector.shape_cast %58 : vector<8xf32> to vector<8x1xf32>
    %60 = vector.broadcast %59 : vector<8x1xf32> to vector<8x8xf32>
    %61 = arith.subf %57, %60 : vector<8x8xf32>
    %62 = math.exp %61 : vector<8x8xf32>
    %cst_22 = arith.constant dense<0.000000e+00> : vector<8xf32>
    %63 = vector.multi_reduction <add>, %62, %cst_22 [1] : vector<8x8xf32> to vector<8xf32>
    %64 = vector.shape_cast %63 : vector<8xf32> to vector<8x1xf32>
    %65 = tpu.reciprocal %64 {approx = true} : vector<8x1xf32> -> vector<8x1xf32>
    %66 = vector.broadcast %65 : vector<8x1xf32> to vector<8x8xf32>
    %67 = arith.mulf %62, %66 : vector<8x8xf32>
    %68 = arith.truncf %67 : vector<8x8xf32> to vector<8x8xbf16>
    %cst_23 = arith.constant dense<0.000000e+00> : vector<8x32xf32>
    %69 = tpu.matmul %68, %52, %cst_23 {dimension_numbers = #tpu.dot_dimension_numbers<[1], [0], [0], [1], [0, 0, 1, 1], [], []>} : vector<8x8xbf16>, vector<8x32xbf16>, vector<8x32xf32> -> vector<8x32xf32>
    %c32 = arith.constant 32 : index
    %c0_24 = arith.constant 0 : index
    %70 = vector.load %arg5[%c32, %c0_24] : memref<128x32xf32, #tpu.memory_space<vmem>>, vector<32x32xf32>
    %cst_25 = arith.constant dense<0.000000e+00> : vector<8x32xf32>
    %71 = tpu.matmul %69, %70, %cst_25 {dimension_numbers = #tpu.dot_dimension_numbers<[1], [0], [0], [1], [0, 0, 1, 1], [], []>} : vector<8x32xf32>, vector<32x32xf32>, vector<8x32xf32> -> vector<8x32xf32>
    %72 = arith.addf %46, %71 : vector<8x32xf32>
    %73 = vector.extract_strided_slice %13 {offsets = [0, 64], sizes = [8, 32], strides = [1, 1]} : vector<8x128xf32> to vector<8x32xf32>
    %74 = arith.truncf %73 : vector<8x32xf32> to vector<8x32xbf16>
    %75 = vector.extract_strided_slice %16 {offsets = [0, 64], sizes = [8, 32], strides = [1, 1]} : vector<8x128xf32> to vector<8x32xf32>
    %76 = arith.truncf %75 : vector<8x32xf32> to vector<8x32xbf16>
    %77 = vector.extract_strided_slice %8 {offsets = [0, 64], sizes = [8, 32], strides = [1, 1]} : vector<8x128xf32> to vector<8x32xf32>
    %78 = arith.truncf %77 : vector<8x32xf32> to vector<8x32xbf16>
    %cst_26 = arith.constant dense<0.000000e+00> : vector<8x8xf32>
    %79 = tpu.matmul %74, %76, %cst_26 {dimension_numbers = #tpu.dot_dimension_numbers<[1], [1], [0], [0], [0, 0, 1, 0], [], []>} : vector<8x32xbf16>, vector<8x32xbf16>, vector<8x8xf32> -> vector<8x8xf32>
    %cst_27 = arith.constant 0.176776692 : f32
    %80 = vector.broadcast %cst_27 : f32 to vector<8x8xf32>
    %81 = arith.mulf %79, %80 : vector<8x8xf32>
    %cst_28 = arith.constant 0xFF800000 : f32
    %82 = vector.broadcast %cst_28 : f32 to vector<8x8xf32>
    %83 = arith.select %19, %81, %82 : vector<8x8xi1>, vector<8x8xf32>
    %cst_29 = arith.constant dense<0xFF800000> : vector<8xf32>
    %84 = vector.multi_reduction <maximumf>, %83, %cst_29 [1] : vector<8x8xf32> to vector<8xf32>
    %85 = vector.shape_cast %84 : vector<8xf32> to vector<8x1xf32>
    %86 = vector.broadcast %85 : vector<8x1xf32> to vector<8x8xf32>
    %87 = arith.subf %83, %86 : vector<8x8xf32>
    %88 = math.exp %87 : vector<8x8xf32>
    %cst_30 = arith.constant dense<0.000000e+00> : vector<8xf32>
    %89 = vector.multi_reduction <add>, %88, %cst_30 [1] : vector<8x8xf32> to vector<8xf32>
    %90 = vector.shape_cast %89 : vector<8xf32> to vector<8x1xf32>
    %91 = tpu.reciprocal %90 {approx = true} : vector<8x1xf32> -> vector<8x1xf32>
    %92 = vector.broadcast %91 : vector<8x1xf32> to vector<8x8xf32>
    %93 = arith.mulf %88, %92 : vector<8x8xf32>
    %94 = arith.truncf %93 : vector<8x8xf32> to vector<8x8xbf16>
    %cst_31 = arith.constant dense<0.000000e+00> : vector<8x32xf32>
    %95 = tpu.matmul %94, %78, %cst_31 {dimension_numbers = #tpu.dot_dimension_numbers<[1], [0], [0], [1], [0, 0, 1, 1], [], []>} : vector<8x8xbf16>, vector<8x32xbf16>, vector<8x32xf32> -> vector<8x32xf32>
    %c64 = arith.constant 64 : index
    %c0_32 = arith.constant 0 : index
    %96 = vector.load %arg5[%c64, %c0_32] : memref<128x32xf32, #tpu.memory_space<vmem>>, vector<32x32xf32>
    %cst_33 = arith.constant dense<0.000000e+00> : vector<8x32xf32>
    %97 = tpu.matmul %95, %96, %cst_33 {dimension_numbers = #tpu.dot_dimension_numbers<[1], [0], [0], [1], [0, 0, 1, 1], [], []>} : vector<8x32xf32>, vector<32x32xf32>, vector<8x32xf32> -> vector<8x32xf32>
    %98 = arith.addf %72, %97 : vector<8x32xf32>
    %99 = vector.extract_strided_slice %13 {offsets = [0, 96], sizes = [8, 32], strides = [1, 1]} : vector<8x128xf32> to vector<8x32xf32>
    %100 = arith.truncf %99 : vector<8x32xf32> to vector<8x32xbf16>
    %101 = vector.extract_strided_slice %16 {offsets = [0, 96], sizes = [8, 32], strides = [1, 1]} : vector<8x128xf32> to vector<8x32xf32>
    %102 = arith.truncf %101 : vector<8x32xf32> to vector<8x32xbf16>
    %103 = vector.extract_strided_slice %8 {offsets = [0, 96], sizes = [8, 32], strides = [1, 1]} : vector<8x128xf32> to vector<8x32xf32>
    %104 = arith.truncf %103 : vector<8x32xf32> to vector<8x32xbf16>
    %cst_34 = arith.constant dense<0.000000e+00> : vector<8x8xf32>
    %105 = tpu.matmul %100, %102, %cst_34 {dimension_numbers = #tpu.dot_dimension_numbers<[1], [1], [0], [0], [0, 0, 1, 0], [], []>} : vector<8x32xbf16>, vector<8x32xbf16>, vector<8x8xf32> -> vector<8x8xf32>
    %cst_35 = arith.constant 0.176776692 : f32
    %106 = vector.broadcast %cst_35 : f32 to vector<8x8xf32>
    %107 = arith.mulf %105, %106 : vector<8x8xf32>
    %cst_36 = arith.constant 0xFF800000 : f32
    %108 = vector.broadcast %cst_36 : f32 to vector<8x8xf32>
    %109 = arith.select %19, %107, %108 : vector<8x8xi1>, vector<8x8xf32>
    %cst_37 = arith.constant dense<0xFF800000> : vector<8xf32>
    %110 = vector.multi_reduction <maximumf>, %109, %cst_37 [1] : vector<8x8xf32> to vector<8xf32>
    %111 = vector.shape_cast %110 : vector<8xf32> to vector<8x1xf32>
    %112 = vector.broadcast %111 : vector<8x1xf32> to vector<8x8xf32>
    %113 = arith.subf %109, %112 : vector<8x8xf32>
    %114 = math.exp %113 : vector<8x8xf32>
    %cst_38 = arith.constant dense<0.000000e+00> : vector<8xf32>
    %115 = vector.multi_reduction <add>, %114, %cst_38 [1] : vector<8x8xf32> to vector<8xf32>
    %116 = vector.shape_cast %115 : vector<8xf32> to vector<8x1xf32>
    %117 = tpu.reciprocal %116 {approx = true} : vector<8x1xf32> -> vector<8x1xf32>
    %118 = vector.broadcast %117 : vector<8x1xf32> to vector<8x8xf32>
    %119 = arith.mulf %114, %118 : vector<8x8xf32>
    %120 = arith.truncf %119 : vector<8x8xf32> to vector<8x8xbf16>
    %cst_39 = arith.constant dense<0.000000e+00> : vector<8x32xf32>
    %121 = tpu.matmul %120, %104, %cst_39 {dimension_numbers = #tpu.dot_dimension_numbers<[1], [0], [0], [1], [0, 0, 1, 1], [], []>} : vector<8x8xbf16>, vector<8x32xbf16>, vector<8x32xf32> -> vector<8x32xf32>
    %c96 = arith.constant 96 : index
    %c0_40 = arith.constant 0 : index
    %122 = vector.load %arg5[%c96, %c0_40] : memref<128x32xf32, #tpu.memory_space<vmem>>, vector<32x32xf32>
    %cst_41 = arith.constant dense<0.000000e+00> : vector<8x32xf32>
    %123 = tpu.matmul %121, %122, %cst_41 {dimension_numbers = #tpu.dot_dimension_numbers<[1], [0], [0], [1], [0, 0, 1, 1], [], []>} : vector<8x32xf32>, vector<32x32xf32>, vector<8x32xf32> -> vector<8x32xf32>
    %124 = arith.addf %98, %123 : vector<8x32xf32>
    %c0_42 = arith.constant 0 : index
    %c0_43 = arith.constant 0 : index
    %125 = vector.load %arg6[%c0_42, %c0_43] : memref<1x32xf32, #tpu.memory_space<vmem>>, vector<1x32xf32>
    %126 = vector.broadcast %125 : vector<1x32xf32> to vector<8x32xf32>
    %127 = arith.addf %124, %126 : vector<8x32xf32>
    %c0_44 = arith.constant 0 : index
    %c0_45 = arith.constant 0 : index
    %c0_46 = arith.constant 0 : index
    %128 = vector.load %arg7[%c0_44, %c0_45, %c0_46] : memref<1x8x32xf32, #tpu.memory_space<vmem>>, vector<1x8x32xf32>
    %129 = vector.shape_cast %128 : vector<1x8x32xf32> to vector<8x32xf32>
    %130 = vector.shape_cast %127 : vector<8x32xf32> to vector<1x8x32xf32>
    tpu.vector_store %arg7[%c0_44, %c0_45, %c0_46], %130 {strides = array<i32>} : memref<1x8x32xf32, #tpu.memory_space<vmem>>, vector<1x8x32xf32>,
    return
  }
  func.func @transform_0(%arg0: i32) -> (i32, i32, i32) {
    %c0_i32 = arith.constant 0 : i32
    %c0_i32_0 = arith.constant 0 : i32
    %c0_i32_1 = arith.constant 0 : i32
    return %arg0, %c0_i32, %c0_i32_0 : i32, i32, i32
  }
  func.func @transform_1(%arg0: i32) -> (i32, i32) {
    %c0_i32 = arith.constant 0 : i32
    %c0_i32_0 = arith.constant 0 : i32
    %c0_i32_1 = arith.constant 0 : i32
    return %c0_i32, %c0_i32_0 : i32, i32
  }
  func.func @transform_2(%arg0: i32) -> (i32, i32) {
    %c0_i32 = arith.constant 0 : i32
    %c0_i32_0 = arith.constant 0 : i32
    %c0_i32_1 = arith.constant 0 : i32
    return %c0_i32, %c0_i32_0 : i32, i32
  }
  func.func @transform_3(%arg0: i32) -> (i32, i32) {
    %c0_i32 = arith.constant 0 : i32
    %c0_i32_0 = arith.constant 0 : i32
    %c0_i32_1 = arith.constant 0 : i32
    return %c0_i32, %c0_i32_0 : i32, i32
  }
  func.func @transform_4(%arg0: i32) -> (i32, i32) {
    %c0_i32 = arith.constant 0 : i32
    %c0_i32_0 = arith.constant 0 : i32
    %c0_i32_1 = arith.constant 0 : i32
    return %c0_i32, %c0_i32_0 : i32, i32
  }
  func.func @transform_5(%arg0: i32) -> (i32, i32) {
    %c0_i32 = arith.constant 0 : i32
    %c0_i32_0 = arith.constant 0 : i32
    %c0_i32_1 = arith.constant 0 : i32
    return %c0_i32, %c0_i32_0 : i32, i32
  }
  func.func @transform_6(%arg0: i32) -> (i32, i32, i32) {
    %c0_i32 = arith.constant 0 : i32
    %c0_i32_0 = arith.constant 0 : i32
    %c0_i32_1 = arith.constant 0 : i32
    return %arg0, %c0_i32, %c0_i32_0 : i32, i32, i32
  }
}

</mosaic_0001>

<bundles_post_ra>
// kernel: tpu_custom_call.1
= control target key start
LH: loop header
LB: loop body
LE: loop exit
PB: predicated region body
PF: predicated region fallthrough
CT: control target
= control target key end

     0   :  { %11 = vsyncpa [#allocation3], 0  ;;  %s1540_s0 = inlined_call_operand.hbm [shape: f32[2,8,32], index: 0, kind: input, shape index: {}]   ;;  %s1541_s1 = inlined_call_operand.vmem [shape: f32[32,640], index: 1, kind: input, shape index: {}]   ;;  %s1542_s2 = inlined_call_operand.hbm [shape: f32[8,128], index: 2, kind: input, shape index: {}]   ;;  %s1543_s3 = inlined_call_operand.hbm [shape: f32[8,128], index: 3, kind: input, shape index: {}]   ;;  %s1544_s4 = inlined_call_operand.vmem [shape: f32[128,32], index: 4, kind: input, shape index: {}]   ;;  %s1545_s5 = inlined_call_operand.vmem [shape: f32[1,32], index: 5, kind: input, shape index: {}]   ;;  %s1546_s6 = inlined_call_operand.hbm [shape: f32[2,8,32], index: 6, kind: output, shape index: {}]  }
   0x1   :  { %13 = vsyncpa [#allocation3 + $0x1], 0 }
   0x2   :  { %14 = vsyncpa [#allocation6], 0 }
   0x3   :  { %15 = vsyncpa [#allocation4], 0 }
   0x4   :  { %17 = vsyncpa [#allocation4 + $0x1], 0  ;;  %s1214_s21 = smov 0   ;;  %s1216_s22 = smov 0  }
   0x5   :  { %s1218_s23 = smov 0   ;;  %s1220_s24 = smov 0  }
   0x6 LB: > { %s1235_s25 = sadd.s32 4294967295, %s1172_s24   ;;  %s892_s26 = sadd.s32 4294967294, %s1172_s24   ;;  %s1172_s24 = sphi %s1220_s24, %s1556_s24   ;;  %s1168_s23 = sphi %s1218_s23, %s1555_s23   ;;  %s1164_s22 = sphi %s1216_s22, %s1554_s22   ;;  %s1160_s21 = sphi %s1214_s21, %s1553_s21  }
   0x7   : > { %p43_p0 = scmp.ne.s32.totalorder %s1164_s22, %s1160_s21  ;;  %p44_p1 = scmp.eq.s32.totalorder %s1235_s25, 0 }
   0x8   : > { %p172_p2 = scmp.eq.s32.totalorder %s1235_s25, 1  ;;  %p178_p3 = scmp.eq.s32.totalorder %s892_s26, 1 }
   0x9   : > { %p1244_p4 = por %p44_p1, %p43_p0  ;;  %p893_p5 = scmp.ge.s32.totalorder %s1172_s24, 1 }
   0xa   : > { %p1249_p6 = por %p178_p3, %p43_p0  ;;  %p185_p7 = scmp.lt.s32.totalorder %s1172_s24, 3 }
   0xb   : > { %s200_s7 = sshll.u32 %s1542_s2, 4  ;;  %s1174_s9 = smov [#allocation5]   ;;  %s201_s7 = int_to_ptr.hbm [resolvable:$true] %s200_s7 }
   0xc   : > { %p1257_p8 = pnand %p893_p5, %p185_p7  ;;  %s202_s10 = sshll.u32 %s1174_s9, 4  ;;  %s203_s10 = int_to_ptr.vmem [resolvable:$true] %s202_s10 }
   0xd   : > { %s212_s13 = sshll.u32 %s1543_s3, 4  ;;  %s1175_s14 = smov [#allocation7]   ;;  %s213_s13 = int_to_ptr.hbm [resolvable:$true] %s212_s13 }
   0xe   : > { %p937_p10 = pneg %p1257_p8  ;;  %s214_s15 = sshll.u32 %s1175_s14, 4  ;;  %s215_s15 = int_to_ptr.vmem [resolvable:$true] %s214_s15 }
   0xf   : > { %s1270_s16 = sadd.s32 1, %s1172_s24   ;;  %s30_s17 = sadd.s32 1, %s1168_s23 }
  0x10   : > { %p938_p11 = pnand %p937_p10, %p44_p1  ;;  %s27_s18 = ssub.s32 %s1172_s24, %s1270_s16 }
  0x11   : > { %p37_p12 = scmp.ne.s32.totalorder %s1168_s23, %s1164_s22  ;;  %p28_p13 = scmp.eq.s32.totalorder %s27_s18, 0 }
  0x12   : > { %940 = dma.hbm_to_vmem [thread:$0]  (!%p938_p11), %s201_s7, 128, %s203_s10, [#allocation6]  }
  0x13   : > { %943 = dma.hbm_to_vmem [thread:$0]  (!%p938_p11), %s213_s13, 128, %s215_s15, [#allocation6]  }
  0x14   : > { %p38_p0 = scmp.eq.s32.totalorder %s1172_s24, 0  ;;  %p1280_p3 = por %p172_p2, %p37_p12 }
  0x15   : > { %p954_p5 = scmp.lt.s32.totalorder %s1172_s24, 2  ;;  %s231_s26 = sand.u32 1, %s1168_s23  }
  0x16   : > { %s1286_s20 = scalar_select %p28_p13, %s1168_s23, %s30_s17  }
  0x17   : > { %p39_p7 = por %p38_p0, %p37_p12  ;;  %s897_s29 = sshll.u32 %s231_s26, 3 }
  0x18   : > { %s898_s30 = sshll.u32 %s1172_s24, 3  ;;  %s235_s11 = scalar_lea.vmem [#allocation2], %s897_s29 }
  0x19   : > { %s239_s10 = scalar_lea.hbm %s1540_s0, %s898_s30  ;;  %s243_s12 = sshll.u32 %s235_s11, 4  ;;  %s244_s12 = int_to_ptr.vmem [resolvable:$true] %s243_s12 }
  0x1a   : > { %s241_s13 = sshll.u32 %s239_s10, 4  ;;  %p1293_p2 = pnand %p954_p5, %p39_p7  ;;  %s242_s13 = int_to_ptr.hbm [resolvable:$true] %s241_s13 }
  0x1b   : > { %s232_s15 = scalar_lea.sflag [#allocation3], %s231_s26  ;;  %s1072_s17 = sshra.s32 %s242_s13, 4  ;;  %s1073_s17 = int_to_ptr.hbm [resolvable:$true] %s1072_s17 }
  0x1c   : > { %s1074_s18 = scalar_lea.hbm %s1073_s17, 8  ;;  %p1076_p11 = pneg %p1293_p2 }
  0x1d   : > { %p1075_p10 = scmp.ne.s32.totalorder %s1073_s17, %s1074_s18  ;;  %s1079_s7 = scalar_lea.hbm %s1540_s0, 16 }
  0x1e   : > { %p1080_p0 = scmp.lt.s32.totalorder %s1073_s17, %s1540_s0  ;;  %p1081_p5 = scmp.lt.s32.totalorder %s1079_s7, %s1074_s18 }
  0x1f   : > { %p1077_p12 = pnand %p1076_p11, %p1075_p10 }
  0x20   : > { %p1082_p7 = por %p1081_p5, %p1080_p0 }
  0x21   : > { %p1078_p13 = pneg %p1077_p12 }
  0x23   : > { %p1083_p9 = pnand %p1082_p7, %p1078_p13 }
  0x25   : > { %1086 = shalt.err (!%p1083_p9)
}
  0x26   : > { %947 = dma.hbm_to_vmem [thread:$0]  (!%p1293_p2), %s242_s13, 128, %s244_s12, %s232_s15  }
  0x27   : > { %252 = sbr.rel (%p1257_p8) target bundleno = 1407 (0x57f), region = 44  ;;  %s1310_s26 = sand.u32 (!%p1257_p8), 1, %s1164_s22  }
  0x28   : > { %s900_s11 = sshll.u32 (!%p1257_p8), %s1310_s26, 3  ;;  %s255_s30 = scalar_lea.sflag (!%p1257_p8), [#allocation3], %s1310_s26 }
  0x29   : > { %s258_s17 = scalar_lea.vmem (!%p1257_p8), [#allocation2], %s900_s11 }
  0x2c   : > { %1147 = dma.done.wait (%p1244_p4), %s255_s30, 128  }
  0x2d   : > { %1149 = vsyncadd (%p1244_p4), %s255_s30, 4294967168 }
  0x2e   : > { %1151 = dma.done.wait (%p44_p1), [#allocation6], 256  }
  0x2f   : > { %1153 = vsyncadd (%p44_p1), [#allocation6], 4294967040  ;;  %v317_v0 = vld [vmem:[%s1541_s1 + $0x88] sm:$0xff]  ;;  %v318_v1 = vld [vmem:[%s1541_s1 + $0x90] sm:$0xff]  ;;  %vm320_vm0 = vcmask 261120   ;;  %s1176_s29 = smov 64   ;;  %v432_v32 = vlaneseq }
  0x30   : > { %v312_v2 = vld [vmem:[%s1541_s1 + $0x60] sm:$0xff]  ;;  %376 = vmatpush.msra.mxu2 %v317_v0  ;;  %396 = vmatpush.msra.mxu3 %v318_v1  ;;  %v313_v3 = vld [vmem:[%s1541_s1 + $0x68] sm:$0xff]  ;;  %v307_v4 = vld [vmem:[%s1541_s1 + $0x38] sm:$0xff]  ;;  %s1177_s7 = smov 32   ;;  %vm461_vm2 = vcmask 64512   ;;  %s1178_s14 = smov 96  }
  0x31   : > { %v308_v5 = vld [vmem:[%s1541_s1 + $0x40] sm:$0xff]  ;;  %v315_v6 = vld [vmem:[%s1541_s1 + $0x78] sm:$0xff]  ;;  %v310_v8 = vld [vmem:[%s1541_s1 + $0x50] sm:$0xff]  ;;  %v1391_v36 = vshrl.u32 %v432_v32, 7  ;;  %v1393_v37 = vand.u32 127, %v432_v32  ;;  %vm477_vm3 = vcmask 1043456  }
  0x32   : > { %377 = vmatpush.msra.mxu2 %v312_v2  ;;  %397 = vmatpush.msra.mxu3 %v313_v3  ;;  %v316_v7 = vld [vmem:[%s1541_s1 + $0x80] sm:$0xff]  ;;  %v302_v9 = vld [vmem:[%s1541_s1 + $0x10] sm:$0xff]  ;;  %v303_v10 = vld [vmem:[%s1541_s1 + $0x18] sm:$0xff]  ;;  %s922_s12 = sshll.u32 %s1235_s25, 3  ;;  %s788_s25 = scalar_lea.sflag [#allocation4], %s1310_s26 }
  0x33   : > { %336 = vmatpush.msra.mxu0 %v315_v6  ;;  %356 = vmatpush.msra.mxu1 %v316_v7  ;;  %v311_v11 = vld [vmem:[%s1541_s1 + $0x58] sm:$0xff]  ;;  %v299_v12 = vld [vmem:[%s258_s17] sm:$0xff]  ;;  %v306_v14 = vld [vmem:[%s1541_s1 + $0x30] sm:$0xff]  ;;  %vm436_vm1 = vcmp.le.s32.totalorder %v1393_v37, %v1391_v36  ;;  %s297_s17 = scalar_lea.vmem [#allocation8], %s900_s11  ;;  %s1122_s11 = scalar_lea.hbm %s1546_s6, 16 }
  0x34   : > { %378 = vmatpush.msra.mxu2 %v307_v4  ;;  %398 = vmatpush.msra.mxu3 %v308_v5  ;;  %v305_v13 = vld [vmem:[%s1541_s1 + $0x28] sm:$0xff]  ;;  %v300_v15 = vld [vmem:[%s1541_s1] sm:$0xff]  ;;  %v424_v17 = vld [vmem:[#allocation5] sm:$0xff]  ;;  %s800_s27 = sshll.u32 %s297_s17, 4  ;;  %s801_s27 = int_to_ptr.vmem [resolvable:$true] %s800_s27 }
  0x35   : > { %337 = vmatpush.msra.mxu0 %v310_v8  ;;  %357 = vmatpush.msra.mxu1 %v311_v11  ;;  %v301_v16 = vld [vmem:[%s1541_s1 + $0x8] sm:$0xff]  ;;  %v425_v18 = vld [vmem:[#allocation7] sm:$0xff]  ;;  %v314_v34 = vld [vmem:[%s1541_s1 + $0x70] sm:$0xff] }
  0x36   : > { %379 = vmatpush.msra.mxu2 %v302_v9  ;;  %399 = vmatpush.msra.mxu3 %v303_v10  ;;  %v319_v33 = vld [vmem:[%s1541_s1 + $0x98] sm:$0xff]  ;;  %v309_v35 = vld [vmem:[%s1541_s1 + $0x48] sm:$0xff]  ;;  %v304_v43 = vld [vmem:[%s1541_s1 + $0x20] sm:$0xff] }
  0x37   : > { %906 = vmatmul.msk.f32.vlgmr.msra.gmra.mxu2 %vm320_vm0, %v299_v12  ;;  %907 = vmatmul.msk.f32.vlgmr.msra.gmra.mxu3 %vm320_vm0, %v299_v12  ;;  %v497_v56 = vld [vmem:[%s1544_s4 + $0x18] sm:$0xff]  ;;  %v496_v57 = vld [vmem:[%s1544_s4 + $0x10] sm:$0xff]  ;;  %v495_v58 = vld [vmem:[%s1544_s4 + $0x8] sm:$0xff] }
  0x38   : > { %338 = vmatpush.msra.mxu0 %v305_v13  ;;  %358 = vmatpush.msra.mxu1 %v306_v14  ;;  %v494_v59 = vld [vmem:[%s1544_s4] sm:$0xff]  ;;  %v560_v36 = vld [vmem:[%s1544_s4 + $0x28] sm:$0xff] }
  0x3a   : > { %339 = vmatpush.msra.mxu0 %v300_v15  ;;  %359 = vmatpush.msra.mxu1 %v301_v16 }
  0x3b   : > { %904 = vmatmul.msk.f32.vlgmr.msra.gmra.mxu0 %vm320_vm0, %v299_v12  ;;  %905 = vmatmul.msk.f32.vlgmr.msra.gmra.mxu1 %vm320_vm0, %v299_v12 }
  0x3c   : > { %416 = vmatpush.msrb.mxu0 %v319_v33 }
  0x3e   : > { %417 = vmatpush.msrb.mxu0 %v314_v34 }
  0x40   : > { %418 = vmatpush.msrb.mxu0 %v309_v35 }
  0x42   : > { %419 = vmatpush.msrb.mxu0 %v304_v43  ;;  %v670_v43 = vld [vmem:[%s1544_s4 + $0x58] sm:$0xff] }
  0x43   : > { %908 = vmatmul.msk.f32.vlgmr.msrb.gmra.mxu0 %vm320_vm0, %v299_v12 }
  0xb8   : > { %v341_v19 = vpop.f32.mrf.mxu0  ;;  %v361_v20 = vpop.f32.mrf.mxu1 }
  0xb9   : > { %v426_v26 = vmul.f32 %v424_v17, %v341_v19  ;;  %v427_v27 = vmul.f32 %v425_v18, %v361_v20 }
  0xba   : > { %v381_v21 = vpop.f32.mrf.mxu2  ;;  %v401_v22 = vpop.f32.mrf.mxu3 }
  0xbb   : > { %v429_v23 = vmul.f32 %v424_v17, %v381_v21  ;;  %v430_v24 = vmul.f32 %v425_v18, %v401_v22  ;;  %v428_v29 = vadd.f32 %v427_v27, %v426_v26 }
  0xbd   : > { %v431_v25 = vadd.f32 %v430_v24, %v429_v23  ;;  %v437_v31 = vpack.c.bf16 %v428_v29, %v428_v29 }
  0xbf   : > { %v438_v28 = vpack.c.bf16 %v431_v25, %v431_v25 }
  0xc0   : > { %v421_v53 = vpop.f32.mrf.mxu0 }
  0xc1   : > { %611 = vrot.lane.b32.xlu2 %v438_v28, %s1176_s29  ;;  %v444_v30 = vsel %vm320_vm0, %v438_v28, 0  ;;  %v1410_v54 = vpack.c.bf16 %v421_v53, %v421_v53 }
  0xc2   : > { %453 = vmatpush.bf16.xpose.msrb.mxu1 %v444_v30 }
  0xc3   : > { %v479_v55 = vsel %vm477_vm3, %v1410_v54, 0 }
  0xc4   : > { %488 = vmatpush.bf16.msrb.mxu2 %v479_v55 }
  0xc8   : > { %601 = vmatpush.msra.mxu2 %v497_v56 }
  0xc9   : > { %609 = vrot.lane.b32.xlu2 %v437_v31, %s1176_s29  ;;  %909 = vmatmul.msk.bf16.vlgmr.msrb.gmra.mxu1 %vm320_vm0, %v437_v31 }
  0xca   : > { %602 = vmatpush.msra.mxu2 %v496_v57  ;;  %v667_v57 = vld [vmem:[%s1544_s4 + $0x40] sm:$0xff] }
  0xcc   : > { %603 = vmatpush.msra.mxu2 %v495_v58 }
  0xce   : > { %604 = vmatpush.msra.mxu2 %v494_v59 }
  0xd1   : > { %697 = vrot.lane.b32.xlu2 %v438_v28, %s1177_s7 }
  0xd9   : > { %695 = vrot.lane.b32.xlu2 %v437_v31, %s1177_s7 }
 0x11b   : > { %v612_v49 = vpop.permute.xlu2 %611 }
 0x11c   : > { %v617_v52 = vsel %vm320_vm0, %v612_v49, 0 }
 0x123   : > { %v610_v60 = vpop.permute.xlu2 %609 }
 0x12b   : > { %v698_v0 = vpop.permute.xlu2 %697 }
 0x12c   : > { %v703_v2 = vsel %vm320_vm0, %v698_v0, 0 }
 0x133   : > { %v696_v5 = vpop.permute.xlu2 %695 }
 0x146   : > { %v455_v38 = vpop.f32.mrf.mxu1 }
 0x147   : > { %v459_v39 = vmul.f32 0.17677669, %v455_v38  ;;  %v562_v38 = vld [vmem:[%s1544_s4 + $0x38] sm:$0xff] }
 0x148   : > { %578 = vmatpush.msra.mxu1 %v562_v38 }
 0x149   : > { %v460_v40 = vsel %vm436_vm1, %v459_v39, -inf  ;;  %v561_v39 = vld [vmem:[%s1544_s4 + $0x30] sm:$0xff] }
 0x14a   : > { %v462_v41 = vsel %vm461_vm2, %v460_v40, -inf  ;;  %579 = vmatpush.msra.mxu1 %v561_v39 }
 0x14b   : > { %463 = vmax.xlane.f32.xlu0 %v462_v41  ;;  %v559_v41 = vld [vmem:[%s1544_s4 + $0x20] sm:$0xff] }
 0x14c   : > { %580 = vmatpush.msra.mxu1 %v560_v36 }
 0x14e   : > { %v457_v42 = vpop.f32.mrf.mxu1  ;;  %581 = vmatpush.msra.mxu1 %v559_v41 }
 0x150   : > { %686 = vmatpush.msrb.mxu1 %v670_v43 }
 0x15f   : > { %502 = vrot.lane.b32.xlu0 %v438_v28, %s1178_s14 }
 0x1be   : > { %v464_v44 = vpop.xlane.xlu0 %463 }
 0x1bf   : > { %v465_v45 = vsub.f32 %v460_v40, %v464_v44  ;;  %v669_v44 = vld [vmem:[%s1544_s4 + $0x50] sm:$0xff] }
 0x1c0   : > { %687 = vmatpush.msrb.mxu1 %v669_v44 }
 0x1c1   : > { %v466_v46 = vmul.f32 1.442695, %v465_v45  ;;  %v668_v45 = vld [vmem:[%s1544_s4 + $0x48] sm:$0xff] }
 0x1c2   : > { %688 = vmatpush.msrb.mxu1 %v668_v45 }
 0x1c3   : > { %996 = vpow2.f32 %v466_v46 }
 0x1c4   : > { %689 = vmatpush.msrb.mxu1 %v667_v57 }
 0x1c9   : > { %v997_v47 = vpop.eup %996 }
 0x1ca   : > { %v468_v48 = vsel %vm461_vm2, %v997_v47, 0.0 }
 0x1cb   : > { %469 = vadd.xlane.f32.xlu1 %v468_v48 }
 0x1d1   : > { %v503_v50 = vpop.permute.xlu0 %502 }
 0x1d2   : > { %v508_v51 = vsel %vm320_vm0, %v503_v50, 0 }
 0x1d3   : > { %517 = vmatpush.bf16.xpose.msrb.mxu3 %v508_v51 }
 0x1db   : > { %626 = vmatpush.bf16.xpose.msra.mxu3 %v617_v52 }
 0x1e4   : > { %499 = vrot.lane.b32.xlu1 %v437_v31, %s1178_s14 }
 0x23e   : > { %v470_v61 = vpop.xlane.xlu1 %469 }
 0x23f   : > { %998 = vrcp.f32 %v470_v61 }
 0x245   : > { %v999_v62 = vpop.eup %998 }
 0x246   : > { %v472_v63 = vmul.f32 %v999_v62, %v997_v47 }
 0x248   : > { %v473_v1 = vpack.c.bf16 %v472_v63, %v472_v63 }
 0x24a   : > { %910 = vmatmul.msk.bf16.vlgmr.msrb.gmra.mxu2 %vm461_vm2, %v473_v1 }
 0x24b   : > { %712 = vmatpush.bf16.xpose.msrb.mxu2 %v703_v2 }
 0x256   : > { %v500_v3 = vpop.permute.xlu1 %499 }
 0x257   : > { %911 = vmatmul.msk.bf16.vlgmr.msrb.gmra.mxu3 %vm320_vm0, %v500_v3 }
 0x267   : > { %915 = vmatmul.msk.bf16.vlgmr.msra.gmra.mxu3 %vm320_vm0, %v610_v60 }
 0x2cd   : > { %v490_v4 = vpop.f32.mrf.mxu2 }
 0x2ce   : > { %914 = vmatmul.msk.f32.vlgmr.msra.gmra.mxu2 %vm320_vm0, %v490_v4  ;;  %v756_v4 = vld [vmem:[%s1544_s4 + $0x78] sm:$0xff] }
 0x2cf   : > { %772 = vmatpush.msrb.mxu3 %v756_v4 }
 0x2d5   : > { %v492_v6 = vpop.f32.mrf.mxu2 }
 0x2d6   : > { %918 = vmatmul.msk.bf16.vlgmr.msrb.gmra.mxu2 %vm320_vm0, %v696_v5  ;;  %v755_v5 = vld [vmem:[%s1544_s4 + $0x70] sm:$0xff]  ;;  %v754_v6 = vld [vmem:[%s1544_s4 + $0x68] sm:$0xff] }
 0x2d7   : > { %773 = vmatpush.msrb.mxu3 %v755_v5 }
 0x2d9   : > { %774 = vmatpush.msrb.mxu3 %v754_v6 }
 0x2da   : > { %v519_v7 = vpop.f32.mrf.mxu3 }
 0x2db   : > { %v523_v8 = vmul.f32 0.17677669, %v519_v7  ;;  %v753_v7 = vld [vmem:[%s1544_s4 + $0x60] sm:$0xff] }
 0x2dc   : > { %775 = vmatpush.msrb.mxu3 %v753_v7 }
 0x2dd   : > { %v524_v9 = vsel %vm436_vm1, %v523_v8, -inf }
 0x2de   : > { %v525_v10 = vsel %vm461_vm2, %v524_v9, -inf }
 0x2df   : > { %526 = vmax.xlane.f32.xlu0 %v525_v10 }
 0x2e2   : > { %v521_v11 = vpop.f32.mrf.mxu3 }
 0x2ea   : > { %v628_v12 = vpop.f32.mrf.mxu3 }
 0x2eb   : > { %v632_v13 = vmul.f32 0.17677669, %v628_v12 }
 0x2ed   : > { %v633_v14 = vsel %vm436_vm1, %v632_v13, -inf }
 0x2ee   : > { %v634_v15 = vsel %vm461_vm2, %v633_v14, -inf }
 0x2ef   : > { %635 = vmax.xlane.f32.xlu2 %v634_v15 }
 0x2f2   : > { %v630_v16 = vpop.f32.mrf.mxu3 }
 0x2f3   : > { %538 = vrot.lane.b32.xlu0 %v1410_v54, %s1178_s14  ;;  %s798_s14 = scalar_lea.hbm %s1546_s6, %s922_s12 }
 0x2f4   : > { %s802_s9 = sshll.u32 %s798_s14, 4  ;;  %s803_s9 = int_to_ptr.hbm [resolvable:$true] %s802_s9 }
 0x2fb   : > { %732 = vrot.lane.b32.xlu0 %v1410_v54, %s1177_s7 }
 0x351   : > { %v1444_v17 = vpop.f32.mrf.mxu2 }
 0x352   : > { %v527_v18 = vpop.xlane.xlu0 %526 }
 0x353   : > { %v528_v19 = vsub.f32 %v524_v9, %v527_v18 }
 0x355   : > { %v529_v20 = vmul.f32 1.442695, %v528_v19 }
 0x357   : > { %1000 = vpow2.f32 %v529_v20 }
 0x359   : > { %v714_v21 = vpop.f32.mrf.mxu2 }
 0x35a   : > { %v718_v32 = vmul.f32 0.17677669, %v714_v21 }
 0x35c   : > { %v719_v33 = vsel %vm436_vm1, %v718_v32, -inf }
 0x35d   : > { %v1001_v22 = vpop.eup %1000  ;;  %v720_v34 = vsel %vm461_vm2, %v719_v33, -inf }
 0x35e   : > { %v531_v23 = vsel %vm461_vm2, %v1001_v22, 0.0 }
 0x35f   : > { %532 = vadd.xlane.f32.xlu1 %v531_v23 }
 0x361   : > { %v716_v24 = vpop.f32.mrf.mxu2 }
 0x362   : > { %v636_v25 = vpop.xlane.xlu2 %635 }
 0x363   : > { %v637_v26 = vsub.f32 %v633_v14, %v636_v25  ;;  %v995_v14 = vld [vmem:[%s1545_s5] ss:$0 sm:$0xff] }
 0x365   : > { %v638_v27 = vmul.f32 1.442695, %v637_v26  ;;  %v539_v28 = vpop.permute.xlu0 %538 }
 0x366   : > { %v544_v29 = vsel %vm477_vm3, %v539_v28, 0 }
 0x367   : > { %1002 = vpow2.f32 %v638_v27  ;;  %553 = vmatpush.bf16.msra.mxu0 %v544_v29 }
 0x36d   : > { %v1003_v30 = vpop.eup %1002  ;;  %v733_v58 = vpop.permute.xlu0 %732 }
 0x36e   : > { %v640_v31 = vsel %vm461_vm2, %v1003_v30, 0.0  ;;  %v738_v60 = vsel %vm477_vm3, %v733_v58, 0 }
 0x36f   : > { %641 = vadd.xlane.f32.xlu2 %v640_v31 }
 0x377   : > { %721 = vmax.xlane.f32.xlu2 %v720_v34 }
 0x378   : > { %646 = vrot.lane.b32.xlu1 %v1410_v54, %s1176_s29  ;;  %s1116_s29 = sshra.s32 %s803_s9, 4  ;;  %s1117_s29 = int_to_ptr.hbm [resolvable:$true] %s1116_s29 }
 0x379   : > { %s1118_s10 = scalar_lea.hbm %s1117_s29, 8  ;;  %p1123_p9 = scmp.lt.s32.totalorder %s1117_s29, %s1546_s6 }
 0x37a   : > { %p1119_p1 = scmp.ne.s32.totalorder %s1117_s29, %s1118_s10  ;;  %p1124_p2 = scmp.lt.s32.totalorder %s1122_s11, %s1118_s10 }
 0x37c   : > { %p1120_p4 = pnand %p1119_p1, %p1280_p3  ;;  %p1125_p10 = por %p1124_p2, %p1123_p9 }
 0x37e   : > { %p1121_p8 = pneg %p1120_p4 }
 0x380   : > { %p1126_p11 = pnand %p1125_p10, %p1121_p8 }
 0x3d2   : > { %v533_v35 = vpop.xlane.xlu1 %532 }
 0x3d3   : > { %1004 = vrcp.f32 %v533_v35 }
 0x3d9   : > { %v1005_v40 = vpop.eup %1004 }
 0x3da   : > { %v535_v37 = vmul.f32 %v1005_v40, %v1001_v22 }
 0x3dc   : > { %v536_v42 = vpack.c.bf16 %v535_v37, %v535_v37 }
 0x3de   : > { %912 = vmatmul.msk.bf16.vlgmr.msra.gmra.mxu0 %vm461_vm2, %v536_v42 }
 0x3e2   : > { %v642_v46 = vpop.xlane.xlu2 %641 }
 0x3e3   : > { %1006 = vrcp.f32 %v642_v46 }
 0x3e9   : > { %v1007_v47 = vpop.eup %1006 }
 0x3ea   : > { %v644_v48 = vmul.f32 %v1007_v47, %v1003_v30  ;;  %v647_v49 = vpop.permute.xlu1 %646  ;;  %v722_v50 = vpop.xlane.xlu2 %721 }
 0x3eb   : > { %v652_v51 = vsel %vm477_vm3, %v647_v49, 0  ;;  %v723_v52 = vsub.f32 %v719_v33, %v722_v50 }
 0x3ec   : > { %v645_v53 = vpack.c.bf16 %v644_v48, %v644_v48  ;;  %661 = vmatpush.bf16.msrb.mxu0 %v652_v51 }
 0x3ed   : > { %v724_v54 = vmul.f32 1.442695, %v723_v52 }
 0x3ef   : > { %1008 = vpow2.f32 %v724_v54  ;;  %916 = vmatmul.msk.bf16.vlgmr.msrb.gmra.mxu0 %vm461_vm2, %v645_v53 }
 0x3f5   : > { %v1009_v55 = vpop.eup %1008 }
 0x3f6   : > { %v726_v56 = vsel %vm461_vm2, %v1009_v55, 0.0 }
 0x3f7   : > { %727 = vadd.xlane.f32.xlu2 %v726_v56 }
 0x45b   : > { %v555_v59 = vpop.f32.mrf.mxu0 }
 0x45c   : > { %913 = vmatmul.msk.f32.vlgmr.msra.gmra.mxu1 %vm320_vm0, %v555_v59 }
 0x45d   : > { %747 = vmatpush.bf16.msra.mxu1 %v738_v60 }
 0x463   : > { %v557_v61 = vpop.f32.mrf.mxu0 }
 0x46a   : > { %v728_v62 = vpop.xlane.xlu2 %727 }
 0x46b   : > { %1010 = vrcp.f32 %v728_v62 }
 0x46c   : > { %v663_v63 = vpop.f32.mrf.mxu0 }
 0x46d   : > { %917 = vmatmul.msk.f32.vlgmr.msrb.gmra.mxu1 %vm320_vm0, %v663_v63 }
 0x471   : > { %v1011_v0 = vpop.eup %1010 }
 0x472   : > { %v730_v1 = vmul.f32 %v1011_v0, %v1009_v55 }
 0x474   : > { %v731_v2 = vpack.c.bf16 %v730_v1, %v730_v1  ;;  %v665_v3 = vpop.f32.mrf.mxu0 }
 0x476   : > { %919 = vmatmul.msk.bf16.vlgmr.msra.gmra.mxu1 %vm461_vm2, %v731_v2 }
 0x4d9   : > { %v583_v8 = vpop.f32.mrf.mxu1 }
 0x4da   : > { %v607_v9 = vadd.f32 %v1444_v17, %v583_v8 }
 0x4ea   : > { %v691_v10 = vpop.f32.mrf.mxu1 }
 0x4eb   : > { %v694_v11 = vadd.f32 %v691_v10, %v607_v9 }
 0x4f3   : > { %v749_v12 = vpop.f32.mrf.mxu1 }
 0x4f4   : > { %920 = vmatmul.msk.f32.vlgmr.msrb.gmra.mxu3 %vm320_vm0, %v749_v12 }
 0x4fb   : > { %v751_v13 = vpop.f32.mrf.mxu1 }
 0x577   : > { %v777_v15 = vpop.f32.mrf.mxu3 }
 0x578   : > { %v780_v16 = vadd.f32 %v777_v15, %v694_v11 }
 0x57a   : > { %v785_v17 = vadd.f32 %v995_v14, %v780_v16 }
 0x57c   : > { %786 = vst.msk [vmem:[%s297_s17] sm:$0xff] %vm320_vm0, %v785_v17 }
 0x57d   : > { %1129 = shalt.err (!%p1126_p11)
}
 0x57e   : > { %935 = dma.vmem_to_hbm [thread:$0]  (%p1280_p3), %s801_s27, 128, %s803_s9, %s788_s25  }
 0x57f PF: > { %s814_s26 = sand.u32 1, %s1160_s21   ;;  %p1552_p12 = scmp.ge.s32.totalorder %s1172_s24, 2 }
 0x580   : > { %s815_s7 = scalar_lea.sflag [#allocation4], %s814_s26 }
 0x581   : > { %p949_p13 = pnand %p1552_p12, %p1249_p6 }
 0x583   : > { %p950_p0 = pneg %p949_p13 }
 0x585   : > { %1155 = dma.done.wait (%p950_p0), %s815_s7, 128  }
 0x586   : > { %1157 = vsyncadd (%p950_p0), %s815_s7, 4294967168  ;;  %p20_p5 = scmp.ge.s32.totalorder %s1270_s16, 4   ;;  %s1553_s21 = smov %s1164_s22 }
 0x587   : > { %s1554_s22 = smov %s1168_s23  ;;  %s1555_s23 = smov %s1286_s20 }
 0x588   : > { %s1556_s24 = smov %s1270_s16  ;;  %22 = sbr.rel (!%p20_p5) target bundleno = 6 (0x6), region = 97 }
 0x58d   :  { %821 = vsyncpa [#allocation3], 1 }
 0x58e   :  { %823 = vsyncpa [#allocation3 + $0x1], 1 }
 0x58f   :  { %824 = vsyncpa [#allocation6], 1 }
 0x590   :  { %825 = vsyncpa [#allocation4], 1 }
 0x591   :  { %827 = vsyncpa [#allocation4 + $0x1], 1 }

</bundles_post_ra>
